<compile_context>
chip_gen: v5e
topology: v5e:2x2
jax: 0.10.0
libtpu: 0.0.40
codegen_flags: <defaults>
</compile_context>

<pallas_src>
import functools

import jax
import jax.numpy as jnp
from jax.experimental import pallas as pl
from jax.experimental.pallas import tpu as pltpu

LANE = 128
BF16_SUBLANE = 16  # bf16 packs (16, 128) per vreg


def _round_up(n, m):
    return ((n + m - 1) // m) * m


@functools.lru_cache(maxsize=1)
def _vmem_capacity_bytes():
    """Generation-aware VMEM capacity; falls back to 64 MiB if unknown."""
    try:
        cap = int(getattr(pltpu.get_tpu_info(), "vmem_capacity_bytes", 0))
        if cap > 0:
            return cap
    except Exception:
        pass
    return 64 * 1024 * 1024


@functools.lru_cache(maxsize=1)
def _buffered_supported():
    """Probe once whether pipeline_mode=pl.Buffered(1) works on this jax/TPU."""
    try:
        spec = pl.BlockSpec((8, 128), lambda i: (0, 0),
                            pipeline_mode=pl.Buffered(1))
    except Exception:
        return False
    try:
        def k(a_ref, o_ref):
            o_ref[...] = a_ref[...] + 1.0
        out = pl.pallas_call(
            k,
            out_shape=jax.ShapeDtypeStruct((8, 128), jnp.float32),
            grid=(1,),
            in_specs=[spec],
            out_specs=pl.BlockSpec((8, 128), lambda i: (0, 0)),
        )(jnp.zeros((8, 128), jnp.float32))
        jax.block_until_ready(out)
        return True
    except Exception:
        return False


def _resident_spec(shape, buffered):
    """BlockSpec for a grid-invariant operand (weights / bias / LN params).

    Single-buffered when supported: the block index never changes, so
    double-buffering would only waste VMEM (the dominant consumer on v7x).
    """
    index_map = lambda i: (0,) * len(shape)
    if buffered:
        return pl.BlockSpec(tuple(shape), index_map, pipeline_mode=pl.Buffered(1))
    return pl.BlockSpec(tuple(shape), index_map)


# ---------------- fused Pallas kernel ----------------

def _fused_mlp_kernel(*refs, true_dims, include_out):
    """refs = (x, [w, b, gamma, beta] * n_layers, [w_out, b_out]?, out)."""
    x_ref = refs[0]
    o_ref = refs[-1]
    h = x_ref[...].astype(jnp.bfloat16)               # cast in-kernel
    idx = 1
    for d_true in true_dims:
        w_ref, b_ref, g_ref, be_ref = refs[idx:idx + 4]
        idx += 4
        # Linear: bf16 x bf16 -> f32 accumulate on the MXU.
        z = jnp.dot(h, w_ref[...], preferred_element_type=jnp.float32)
        z = jnp.maximum(z + b_ref[...], 0.0)          # bias + ReLU (f32, VPU)
        # LayerNorm over the TRUE width (padded lanes of z are exactly 0).
        inv_d = 1.0 / float(d_true)
        mean = jnp.sum(z, axis=-1, keepdims=True) * inv_d
        diff = z - mean
        d_pad = w_ref.shape[-1]
        if d_pad != d_true:
            # two-pass variance with padded lanes masked out of the reduction.
            lane = jax.lax.broadcasted_iota(jnp.int32, diff.shape, diff.ndim - 1)
            diff_v = jnp.where(lane < d_true, diff, 0.0)
        else:
            diff_v = diff
        var = jnp.sum(diff_v * diff_v, axis=-1, keepdims=True) * inv_d
        zn = diff * jax.lax.rsqrt(var + 1e-5)         # rsqrt -> EUP slot
        # padded lanes of zn are nonzero, but gamma/beta pads are 0, so h's
        # padded lanes are exactly 0 again (keeps downstream stats exact).
        h = (zn * g_ref[...] + be_ref[...]).astype(jnp.bfloat16)
        # Dropout(p) == identity in eval mode.
    if include_out:
        wo_ref, bo_ref = refs[idx], refs[idx + 1]
        y = jnp.dot(h, wo_ref[...], preferred_element_type=jnp.float32)
        o_ref[...] = (y + bo_ref[...]).astype(o_ref.dtype)
    else:
        o_ref[...] = h.astype(o_ref.dtype)


# ---------------- one-time parameter preparation ----------------

def prepare_dense_encoder_params(params):
    """Pad to lane-dense widths + cast weights to bf16 ONCE (hoisted out of
    the forward). Greedily splits layers into segments whose resident padded
    parameters fit ~50% of VMEM (fallback for very large stacks).

    Returns (prepared_arrays_pytree, meta) with meta hashable/static."""
    vmem_cap = _vmem_capacity_bytes()
    seg_param_budget = max(int(0.5 * vmem_cap), 8 * 1024 * 1024)
    buffered = _buffered_supported()

    def pad2(a, rows, cols, dtype):
        a = jnp.asarray(a, jnp.float32)
        if a.ndim == 1:
            a = a[None, :]
        a = jnp.pad(a, ((0, rows - a.shape[0]), (0, cols - a.shape[1])))
        return a.astype(dtype)

    layers = params["layers"]
    wo, bo = params["out"]
    latent = int(wo.shape[1])
    lat_pad = _round_up(latent, LANE)

    segments_arrays, segments_meta = [], []
    cur_layers, cur_true, cur_bytes = [], [], 0

    prev_true = int(layers[0][0].shape[0]) if layers else int(wo.shape[0])
    prev_pad = _round_up(prev_true, LANE)
    for (w, b, g, be) in layers:
        d_true = int(w.shape[1])
        d_pad = _round_up(d_true, LANE)
        nbytes = prev_pad * d_pad * 2 + 3 * d_pad * 4
        if cur_layers and cur_bytes + nbytes > seg_param_budget:
            segments_arrays.append({"layers": cur_layers, "out": None})
            segments_meta.append((tuple(cur_true), False))
            cur_layers, cur_true, cur_bytes = [], [], 0
        cur_layers.append((pad2(w, prev_pad, d_pad, jnp.bfloat16),
                           pad2(b, 1, d_pad, jnp.float32),
                           pad2(g, 1, d_pad, jnp.float32),
                           pad2(be, 1, d_pad, jnp.float32)))
        cur_true.append(d_true)
        cur_bytes += nbytes
        prev_pad = d_pad

    out_bytes = prev_pad * lat_pad * 2 + lat_pad * 4
    if cur_layers and cur_bytes + out_bytes > seg_param_budget:
        segments_arrays.append({"layers": cur_layers, "out": None})
        segments_meta.append((tuple(cur_true), False))
        cur_layers, cur_true = [], []
    segments_arrays.append({
        "layers": cur_layers,
        "out": (pad2(wo, prev_pad, lat_pad, jnp.bfloat16),
                pad2(bo, 1, lat_pad, jnp.float32)),
    })
    segments_meta.append((tuple(cur_true), True))

    meta = (tuple(segments_meta), latent, bool(buffered))
    return {"segments": segments_arrays}, meta


# ---------------- per-segment pallas_call ----------------

def _run_segment(x_p, seg, true_dims, include_out, tm, vmem_cap, buffered):
    m_pad, din_pad = x_p.shape

    ops = [x_p]
    in_specs = [pl.BlockSpec((tm, din_pad), lambda i: (i, 0))]

    flops = 0
    param_bytes = 0
    d_max = din_pad
    prev_pad = din_pad
    for (w_p, b_p, g_p, be_p) in seg["layers"]:
        ops += [w_p, b_p, g_p, be_p]
        in_specs += [_resident_spec(w_p.shape, buffered),
                     _resident_spec(b_p.shape, buffered),
                     _resident_spec(g_p.shape, buffered),
                     _resident_spec(be_p.shape, buffered)]
        flops += 2 * m_pad * w_p.shape[0] * w_p.shape[1]
        param_bytes += (w_p.size * w_p.dtype.itemsize
                        + (b_p.size + g_p.size + be_p.size) * 4)
        d_max = max(d_max, w_p.shape[1])
        prev_pad = w_p.shape[1]

    if include_out:
        wo_p, bo_p = seg["out"]
        ops += [wo_p, bo_p]
        in_specs += [_resident_spec(wo_p.shape, buffered),
                     _resident_spec(bo_p.shape, buffered)]
        flops += 2 * m_pad * wo_p.shape[0] * wo_p.shape[1]
        param_bytes += wo_p.size * wo_p.dtype.itemsize + bo_p.size * 4
        out_pad = wo_p.shape[1]
        d_max = max(d_max, out_pad)
        out_dtype = jnp.float32
    else:
        out_pad = prev_pad
        out_dtype = jnp.bfloat16        # intermediate round trip stays bf16

    out_spec = pl.BlockSpec((tm, out_pad), lambda i: (i, 0))
    out_itemsize = jnp.dtype(out_dtype).itemsize

    # VMEM: single-buffered params + double-buffered x/out tiles
    # + ~4 live f32 (tm, d_max) temporaries + the bf16 h.
    x_tile = 2 * tm * din_pad * x_p.dtype.itemsize
    out_tile = 2 * tm * out_pad * out_itemsize
    act_bytes = 4 * (4 * tm * d_max) + 2 * tm * d_max
    vmem_est = param_bytes + x_tile + out_tile + act_bytes
    vmem_limit = int(min(max(int(1.3 * vmem_est) + (2 << 20), 16 << 20),
                         int(0.9 * vmem_cap)))

    bytes_accessed = (param_bytes
                      + m_pad * din_pad * x_p.dtype.itemsize
                      + m_pad * out_pad * out_itemsize)

    kernel = functools.partial(_fused_mlp_kernel,
                               true_dims=tuple(true_dims),
                               include_out=include_out)

    return pl.pallas_call(
        kernel,
        out_shape=jax.ShapeDtypeStruct((m_pad, out_pad), out_dtype),
        grid=(m_pad // tm,),
        in_specs=in_specs,
        out_specs=out_spec,
        compiler_params=pltpu.CompilerParams(
            dimension_semantics=("parallel",),     # batch tiles independent
            vmem_limit_bytes=vmem_limit,
        ),
        cost_estimate=pl.CostEstimate(
            flops=int(flops),
            transcendentals=int(len(true_dims) * m_pad),
            bytes_accessed=int(bytes_accessed),
        ),
    )(*ops)


# ---------------- forward ----------------

def dense_encoder_forward(prepared, x_nchw, meta):
    """x_nchw: (B, C, H, W) float32 -> (B, latent_space_dim) float32 (eval)."""
    seg_metas, latent, buffered = meta
    segments = prepared["segments"]
    vmem_cap = _vmem_capacity_bytes()

    B = x_nchw.shape[0]
    x = jnp.asarray(x_nchw, jnp.float32).reshape(B, -1)     # nn.Flatten()
    din = x.shape[1]
    din_pad = _round_up(din, LANE)

    # ---- sizes across the whole stack (for tile / VMEM budgeting) ----
    d_max = din_pad
    param_bytes_max = 0
    for seg in segments:
        pb = 0
        for (w_p, b_p, g_p, be_p) in seg["layers"]:
            pb += (w_p.size * w_p.dtype.itemsize
                   + (b_p.size + g_p.size + be_p.size) * 4)
            d_max = max(d_max, w_p.shape[1])
        if seg["out"] is not None:
            wo_p, bo_p = seg["out"]
            pb += wo_p.size * wo_p.dtype.itemsize + bo_p.size * 4
            d_max = max(d_max, wo_p.shape[1])
        param_bytes_max = max(param_bytes_max, pb)

    # ---- batch tile: largest that fits the budget; >=2 grid steps when
    # there is enough work so both v7x TensorCores are fed. ----
    m16 = _round_up(max(B, 1), BF16_SUBLANE)   # bf16 packs (16,128) per vreg
    per_row = 4 * 4 * d_max + 2 * d_max + 2 * 4 * din_pad + 2 * 4 * d_max
    act_budget = max(int(0.85 * vmem_cap) - param_bytes_max - (2 << 20),
                     per_row * BF16_SUBLANE)
    if m16 <= LANE:
        tm = m16
    else:
        tm = max(LANE, min(512, (act_budget // per_row) // LANE * LANE))
        tm = min(tm, _round_up(m16, LANE))
        if m16 >= 2 * LANE:                    # keep grid >= 2 (megacore)
            tm = min(tm, _round_up((m16 + 1) // 2, LANE))
    m_pad = _round_up(m16, tm)

    # ---- input: skip the pad/cast copy entirely when already aligned ----
    if m_pad == B and din_pad == din:
        x_p = x                                # f32 passthrough; kernel casts
    else:
        # a padding copy is unavoidable -> fold the bf16 cast into it
        x_p = jnp.pad(x, ((0, m_pad - B), (0, din_pad - din))).astype(jnp.bfloat16)

    h = x_p
    for seg, (true_dims, include_out) in zip(segments, seg_metas):
        h = _run_segment(h, seg, true_dims, include_out, tm, vmem_cap, buffered)

    return h[:B, :latent].astype(jnp.float32)


# ---------------- parameter init (matches PyTorch Linear / LayerNorm) ----------------

def init_dense_encoder_params(key, input_shape, hidden_layers, latent_space_dim):
    C, H, W = input_shape
    input_size = C * H * W
    sizes = [input_size] + list(hidden_layers)
    params = {"layers": [], "out": None}
    for i in range(len(hidden_layers)):
        din, dout = sizes[i], sizes[i + 1]
        key, kw, kb = jax.random.split(key, 3)
        bound = 1.0 / (din ** 0.5)
        w = jax.random.uniform(kw, (din, dout), jnp.float32, -bound, bound)
        b = jax.random.uniform(kb, (1, dout), jnp.float32, -bound, bound)
        params["layers"].append((w, b,
                                 jnp.ones((1, dout), jnp.float32),
                                 jnp.zeros((1, dout), jnp.float32)))
    din = sizes[-1]
    key, kw, kb = jax.random.split(key, 3)
    bound = 1.0 / (din ** 0.5)
    wo = jax.random.uniform(kw, (din, latent_space_dim), jnp.float32, -bound, bound)
    bo = jax.random.uniform(kb, (1, latent_space_dim), jnp.float32, -bound, bound)
    params["out"] = (wo, bo)
    return params


# ---------------- plain-JAX reference (same bf16 matmul policy) ----------------

def _reference_forward(params, x_nchw):
    B = x_nchw.shape[0]
    h = x_nchw.reshape(B, -1).astype(jnp.float32).astype(jnp.bfloat16)
    for (w, b, g, be) in params["layers"]:
        z = jnp.dot(h, w.astype(jnp.bfloat16), preferred_element_type=jnp.float32)
        z = jnp.maximum(z + b, 0.0)
        m = z.mean(-1, keepdims=True)
        v = ((z - m) ** 2).mean(-1, keepdims=True)
        h = ((z - m) * jax.lax.rsqrt(v + 1e-5) * g + be).astype(jnp.bfloat16)
    wo, bo = params["out"]
    return jnp.dot(h, wo.astype(jnp.bfloat16), preferred_element_type=jnp.float32) + bo


if __name__ == "__main__":
    # Module-consistent small shapes: input_shape=(4,16,16) -> input_size=1024
    input_shape = (4, 16, 16)
    hidden_layers = (32,)
    latent_space_dim = 2
    batch = 2

    key = jax.random.PRNGKey(0)
    key, kx = jax.random.split(key)
    x = jax.random.normal(kx, (batch,) + input_shape, dtype=jnp.float32)

    params = init_dense_encoder_params(key, input_shape, hidden_layers,
                                       latent_space_dim)

    # one-time pad + bf16 cast of all parameters (hoisted out of the forward)
    prepared, meta = prepare_dense_encoder_params(params)

    fwd = jax.jit(dense_encoder_forward, static_argnames=("meta",))
    out = jax.block_until_ready(fwd(prepared, x, meta=meta))

    ref = _reference_forward(params, x)
    assert out.shape == (batch, latent_space_dim)
    assert jnp.allclose(out, ref, atol=2e-2, rtol=2e-2), (out, ref)

    print("KERNEL_OK")
</pallas_src>

<mosaic_0001>
module attributes {stable_mosaic.version = 11 : i64} {
  func.func @k(%arg0: i32, %arg1: memref<8x128xf32, #tpu.memory_space<vmem>>, %arg2: memref<8x128xf32, #tpu.memory_space<vmem>>) attributes {dimension_semantics = [#tpu.dimension_semantics<arbitrary>], iteration_bounds = array<i64: 1>, scalar_prefetch = 0 : i64, scratch_operands = 0 : i64, tpu.core_type = #tpu.core_type<tc>, window_params = [{pipeline_mode = #tpu.pipeline_mode<synchronous>, transform_indices = @transform_0, window_bounds = array<i64: 8, 128>}, {pipeline_mode = #tpu.pipeline_mode<synchronous>, transform_indices = @transform_1, window_bounds = array<i64: 8, 128>}]} {
    %c0 = arith.constant 0 : index
    %c0_0 = arith.constant 0 : index
    %0 = vector.load %arg1[%c0, %c0_0] : memref<8x128xf32, #tpu.memory_space<vmem>>, vector<8x128xf32>
    %cst = arith.constant 1.000000e+00 : f32
    %1 = vector.broadcast %cst : f32 to vector<8x128xf32>
    %2 = arith.addf %0, %1 : vector<8x128xf32>
    %c0_1 = arith.constant 0 : index
    %c0_2 = arith.constant 0 : index
    %3 = vector.load %arg2[%c0_1, %c0_2] : memref<8x128xf32, #tpu.memory_space<vmem>>, vector<8x128xf32>
    tpu.vector_store %arg2[%c0_1, %c0_2], %2 {strides = array<i32>} : memref<8x128xf32, #tpu.memory_space<vmem>>, vector<8x128xf32>,
    return
  }
  func.func @transform_0(%arg0: i32) -> (i32, i32) {
    %c0_i32 = arith.constant 0 : i32
    %c0_i32_0 = arith.constant 0 : i32
    %c0_i32_1 = arith.constant 0 : i32
    return %c0_i32, %c0_i32_0 : i32, i32
  }
  func.func @transform_1(%arg0: i32) -> (i32, i32) {
    %c0_i32 = arith.constant 0 : i32
    %c0_i32_0 = arith.constant 0 : i32
    %c0_i32_1 = arith.constant 0 : i32
    return %c0_i32, %c0_i32_0 : i32, i32
  }
}

module attributes {stable_mosaic.version = 11 : i64} {
  func.func @_fused_mlp_kernel(%arg0: i32, %arg1: memref<16x1024xbf16, #tpu.memory_space<vmem>>, %arg2: memref<1024x128xbf16, #tpu.memory_space<vmem>>, %arg3: memref<1x128xf32, #tpu.memory_space<vmem>>, %arg4: memref<1x128xf32, #tpu.memory_space<vmem>>, %arg5: memref<1x128xf32, #tpu.memory_space<vmem>>, %arg6: memref<128x128xbf16, #tpu.memory_space<vmem>>, %arg7: memref<1x128xf32, #tpu.memory_space<vmem>>, %arg8: memref<16x128xf32, #tpu.memory_space<vmem>>) attributes {dimension_semantics = [#tpu.dimension_semantics<parallel>], iteration_bounds = array<i64: 1>, scalar_prefetch = 0 : i64, scratch_operands = 0 : i64, tpu.core_type = #tpu.core_type<tc>, window_params = [{transform_indices = @transform_0, window_bounds = array<i64: 16, 1024>}, {pipeline_mode = #tpu.pipeline_mode<synchronous>, transform_indices = @transform_1, window_bounds = array<i64: 1024, 128>}, {pipeline_mode = #tpu.pipeline_mode<synchronous>, transform_indices = @transform_2, window_bounds = array<i64: 1, 128>}, {pipeline_mode = #tpu.pipeline_mode<synchronous>, transform_indices = @transform_3, window_bounds = array<i64: 1, 128>}, {pipeline_mode = #tpu.pipeline_mode<synchronous>, transform_indices = @transform_4, window_bounds = array<i64: 1, 128>}, {pipeline_mode = #tpu.pipeline_mode<synchronous>, transform_indices = @transform_5, window_bounds = array<i64: 128, 128>}, {pipeline_mode = #tpu.pipeline_mode<synchronous>, transform_indices = @transform_6, window_bounds = array<i64: 1, 128>}, {transform_indices = @transform_7, window_bounds = array<i64: 16, 128>}]} {
    %c0 = arith.constant 0 : index
    %c0_0 = arith.constant 0 : index
    %0 = vector.load %arg1[%c0, %c0_0] : memref<16x1024xbf16, #tpu.memory_space<vmem>>, vector<16x1024xbf16>
    %c0_1 = arith.constant 0 : index
    %c0_2 = arith.constant 0 : index
    %1 = vector.load %arg2[%c0_1, %c0_2] : memref<1024x128xbf16, #tpu.memory_space<vmem>>, vector<1024x128xbf16>
    %cst = arith.constant dense<0.000000e+00> : vector<16x128xf32>
    %2 = tpu.matmul %0, %1, %cst {dimension_numbers = #tpu.dot_dimension_numbers<[1], [0], [0], [1], [0, 0, 1, 1], [], []>} : vector<16x1024xbf16>, vector<1024x128xbf16>, vector<16x128xf32> -> vector<16x128xf32>
    %c0_3 = arith.constant 0 : index
    %c0_4 = arith.constant 0 : index
    %3 = vector.load %arg3[%c0_3, %c0_4] : memref<1x128xf32, #tpu.memory_space<vmem>>, vector<1x128xf32>
    %4 = vector.broadcast %3 : vector<1x128xf32> to vector<16x128xf32>
    %5 = arith.addf %2, %4 : vector<16x128xf32>
    %cst_5 = arith.constant 0.000000e+00 : f32
    %6 = vector.broadcast %cst_5 : f32 to vector<16x128xf32>
    %7 = arith.maximumf %5, %6 : vector<16x128xf32>
    %cst_6 = arith.constant dense<0.000000e+00> : vector<16xf32>
    %8 = vector.multi_reduction <add>, %7, %cst_6 [1] : vector<16x128xf32> to vector<16xf32>
    %9 = vector.shape_cast %8 : vector<16xf32> to vector<16x1xf32>
    %cst_7 = arith.constant 3.125000e-02 : f32
    %10 = vector.broadcast %cst_7 : f32 to vector<16x1xf32>
    %11 = arith.mulf %9, %10 : vector<16x1xf32>
    %12 = vector.broadcast %11 : vector<16x1xf32> to vector<16x128xf32>
    %13 = arith.subf %7, %12 : vector<16x128xf32>
    %14 = tpu.iota {dimensions = array<i32: 1>} : vector<16x128xi32>
    %c32_i32 = arith.constant 32 : i32
    %15 = vector.broadcast %c32_i32 : i32 to vector<16x128xi32>
    %16 = arith.cmpi slt, %14, %15 : vector<16x128xi32>
    %cst_8 = arith.constant 0.000000e+00 : f32
    %17 = vector.broadcast %cst_8 : f32 to vector<16x128xf32>
    %18 = arith.select %16, %13, %17 : vector<16x128xi1>, vector<16x128xf32>
    %19 = arith.mulf %18, %18 : vector<16x128xf32>
    %cst_9 = arith.constant dense<0.000000e+00> : vector<16xf32>
    %20 = vector.multi_reduction <add>, %19, %cst_9 [1] : vector<16x128xf32> to vector<16xf32>
    %21 = vector.shape_cast %20 : vector<16xf32> to vector<16x1xf32>
    %cst_10 = arith.constant 3.125000e-02 : f32
    %22 = vector.broadcast %cst_10 : f32 to vector<16x1xf32>
    %23 = arith.mulf %21, %22 : vector<16x1xf32>
    %cst_11 = arith.constant 9.99999974E-6 : f32
    %24 = vector.broadcast %cst_11 : f32 to vector<16x1xf32>
    %25 = arith.addf %23, %24 : vector<16x1xf32>
    %26 = math.rsqrt %25 : vector<16x1xf32>
    %27 = vector.broadcast %26 : vector<16x1xf32> to vector<16x128xf32>
    %28 = arith.mulf %13, %27 : vector<16x128xf32>
    %c0_12 = arith.constant 0 : index
    %c0_13 = arith.constant 0 : index
    %29 = vector.load %arg4[%c0_12, %c0_13] : memref<1x128xf32, #tpu.memory_space<vmem>>, vector<1x128xf32>
    %30 = vector.broadcast %29 : vector<1x128xf32> to vector<16x128xf32>
    %31 = arith.mulf %28, %30 : vector<16x128xf32>
    %c0_14 = arith.constant 0 : index
    %c0_15 = arith.constant 0 : index
    %32 = vector.load %arg5[%c0_14, %c0_15] : memref<1x128xf32, #tpu.memory_space<vmem>>, vector<1x128xf32>
    %33 = vector.broadcast %32 : vector<1x128xf32> to vector<16x128xf32>
    %34 = arith.addf %31, %33 : vector<16x128xf32>
    %35 = arith.truncf %34 : vector<16x128xf32> to vector<16x128xbf16>
    %c0_16 = arith.constant 0 : index
    %c0_17 = arith.constant 0 : index
    %36 = vector.load %arg6[%c0_16, %c0_17] : memref<128x128xbf16, #tpu.memory_space<vmem>>, vector<128x128xbf16>
    %cst_18 = arith.constant dense<0.000000e+00> : vector<16x128xf32>
    %37 = tpu.matmul %35, %36, %cst_18 {dimension_numbers = #tpu.dot_dimension_numbers<[1], [0], [0], [1], [0, 0, 1, 1], [], []>} : vector<16x128xbf16>, vector<128x128xbf16>, vector<16x128xf32> -> vector<16x128xf32>
    %c0_19 = arith.constant 0 : index
    %c0_20 = arith.constant 0 : index
    %38 = vector.load %arg7[%c0_19, %c0_20] : memref<1x128xf32, #tpu.memory_space<vmem>>, vector<1x128xf32>
    %39 = vector.broadcast %38 : vector<1x128xf32> to vector<16x128xf32>
    %40 = arith.addf %37, %39 : vector<16x128xf32>
    %c0_21 = arith.constant 0 : index
    %c0_22 = arith.constant 0 : index
    %41 = vector.load %arg8[%c0_21, %c0_22] : memref<16x128xf32, #tpu.memory_space<vmem>>, vector<16x128xf32>
    tpu.vector_store %arg8[%c0_21, %c0_22], %40 {strides = array<i32>} : memref<16x128xf32, #tpu.memory_space<vmem>>, vector<16x128xf32>,
    return
  }
  func.func @transform_0(%arg0: i32) -> (i32, i32) {
    %c0_i32 = arith.constant 0 : i32
    %c0_i32_0 = arith.constant 0 : i32
    return %arg0, %c0_i32 : i32, i32
  }
  func.func @transform_1(%arg0: i32) -> (i32, i32) {
    %c0_i32 = arith.constant 0 : i32
    %c0_i32_0 = arith.constant 0 : i32
    %c0_i32_1 = arith.constant 0 : i32
    return %c0_i32, %c0_i32_0 : i32, i32
  }
  func.func @transform_2(%arg0: i32) -> (i32, i32) {
    %c0_i32 = arith.constant 0 : i32
    %c0_i32_0 = arith.constant 0 : i32
    %c0_i32_1 = arith.constant 0 : i32
    return %c0_i32, %c0_i32_0 : i32, i32
  }
  func.func @transform_3(%arg0: i32) -> (i32, i32) {
    %c0_i32 = arith.constant 0 : i32
    %c0_i32_0 = arith.constant 0 : i32
    %c0_i32_1 = arith.constant 0 : i32
    return %c0_i32, %c0_i32_0 : i32, i32
  }
  func.func @transform_4(%arg0: i32) -> (i32, i32) {
    %c0_i32 = arith.constant 0 : i32
    %c0_i32_0 = arith.constant 0 : i32
    %c0_i32_1 = arith.constant 0 : i32
    return %c0_i32, %c0_i32_0 : i32, i32
  }
  func.func @transform_5(%arg0: i32) -> (i32, i32) {
    %c0_i32 = arith.constant 0 : i32
    %c0_i32_0 = arith.constant 0 : i32
    %c0_i32_1 = arith.constant 0 : i32
    return %c0_i32, %c0_i32_0 : i32, i32
  }
  func.func @transform_6(%arg0: i32) -> (i32, i32) {
    %c0_i32 = arith.constant 0 : i32
    %c0_i32_0 = arith.constant 0 : i32
    %c0_i32_1 = arith.constant 0 : i32
    return %c0_i32, %c0_i32_0 : i32, i32
  }
  func.func @transform_7(%arg0: i32) -> (i32, i32) {
    %c0_i32 = arith.constant 0 : i32
    %c0_i32_0 = arith.constant 0 : i32
    return %arg0, %c0_i32 : i32, i32
  }
}

</mosaic_0001>

<bundles_post_ra>
// kernel: tpu_custom_call.1
= control target key start
LH: loop header
LB: loop body
LE: loop exit
PB: predicated region body
PF: predicated region fallthrough
CT: control target
= control target key end

     0   :  { %6 = vsyncpa [#allocation3], 0  ;;  %s115_s0 = inlined_call_operand.hbm [shape: f32[8,128], index: 0, kind: input, shape index: {}]   ;;  %s116_s1 = inlined_call_operand.hbm [shape: f32[8,128], index: 1, kind: output, shape index: {}]  }
   0x1   :  { %7 = vsyncpa [#allocation4], 0  ;;  %s13_s8 = sshll.u32 %s115_s0, 4  ;;  %s97_s9 = smov [#allocation2]   ;;  %s14_s8 = int_to_ptr.hbm [resolvable:$true] %s13_s8 }
   0x2   :  { %s15_s10 = sshll.u32 %s97_s9, 4  ;;  %s16_s10 = int_to_ptr.vmem [resolvable:$true] %s15_s10 }
   0x3   :  { %18 = dma.hbm_to_vmem [thread:$0]  %s14_s8, 128, %s16_s10, [#allocation3]  }
   0x4   :  { %93 = dma.done.wait [#allocation3], 128  }
   0x5   :  { %94 = vsyncadd [#allocation3], 4294967168  ;;  %s98_s11 = smov [#allocation5]   ;;  %s33_s15 = sshll.u32 %s116_s1, 4  ;;  %v23_v0 = vld [vmem:[#allocation2] sm:$0xff]  ;;  %s34_s15 = int_to_ptr.hbm [resolvable:$true] %s33_s15 }
   0x6   :  { %s31_s12 = sshll.u32 %s98_s11, 4  ;;  %v24_v1 = vadd.f32 1.0, %v23_v0  ;;  %s32_s12 = int_to_ptr.vmem [resolvable:$true] %s31_s12 }
   0x8   :  { %25 = vst [vmem:[#allocation5] sm:$0xff] %v24_v1 }
   0x9   :  { %36 = dma.vmem_to_hbm [thread:$0]  %s32_s12, 128, %s34_s15, [#allocation4]  }
   0xa   :  { %95 = dma.done.wait [#allocation4], 128  }
   0xb   :  { %96 = vsyncadd [#allocation4], 4294967168 }
   0xc   :  { %41 = vsyncpa [#allocation3], 1 }
   0xd   :  { %42 = vsyncpa [#allocation4], 1 }

// kernel: dense_encoder_forward.1
= control target key start
LH: loop header
LB: loop body
LE: loop exit
PB: predicated region body
PF: predicated region fallthrough
CT: control target
= control target key end

     0   :  { %12 = vsyncpa [#allocation3], 0  ;;  %s1304_s27 = smov [#allocation2]   ;;  %s1305_s29 = smov 64   ;;  %s1440_s0 = inlined_call_operand.vmem [shape: bf16[16,1024], index: 0, kind: input, shape index: {}]   ;;  %s1441_s1 = inlined_call_operand.hbm [shape: bf16[1024,128], index: 1, kind: input, shape index: {}]   ;;  %s1442_s2 = inlined_call_operand.vmem [shape: f32[1,128], index: 2, kind: input, shape index: {}]   ;;  %s1443_s3 = inlined_call_operand.vmem [shape: f32[1,128], index: 3, kind: input, shape index: {}]   ;;  %s1444_s4 = inlined_call_operand.vmem [shape: f32[1,128], index: 4, kind: input, shape index: {}]   ;;  %s1445_s5 = inlined_call_operand.vmem [shape: bf16[128,128], index: 5, kind: input, shape index: {}]   ;;  %s1446_s6 = inlined_call_operand.vmem [shape: f32[1,128], index: 6, kind: input, shape index: {}]   ;;  %s1447_s7 = inlined_call_operand.vmem [shape: f32[16,128], index: 7, kind: output, shape index: {}]  }
   0x1   :  { %s19_s26 = sshll.u32 %s1441_s1, 4  ;;  %s21_s28 = sshll.u32 %s1304_s27, 4  ;;  %s20_s26 = int_to_ptr.hbm [resolvable:$true] %s19_s26  ;;  %s22_s28 = int_to_ptr.vmem [resolvable:$true] %s21_s28 }
   0x2   :  { %s1306_s30 = smov 4  }
   0x3   :  { %27 = dma.hbm_to_vmem [thread:$0]  %s20_s26, 8192, %s22_s28, [#allocation3], %s1305_s29, %s1305_s29, %s1306_s30  }
   0x4   :  { %1302 = dma.done.wait [#allocation3], 8192  }
   0x5   :  { %1303 = vsyncadd [#allocation3], 4294959104  ;;  %v1202_v0 = vld [vmem:[#allocation2 + $0x38] sm:$0xff]  ;;  %v1201_v4 = vld [vmem:[#allocation2 + $0x30] sm:$0xff] }
   0x6   :  { %v1210_v1 = vld [vmem:[#allocation2 + $0x78] sm:$0xff]  ;;  %606 = vmatpush.bf16.msra.mxu0 %v1202_v0  ;;  %v1209_v5 = vld [vmem:[#allocation2 + $0x70] sm:$0xff]  ;;  %v1200_v8 = vld [vmem:[#allocation2 + $0x28] sm:$0xff] }
   0x7   :  { %v1218_v2 = vld [vmem:[#allocation2 + $0xb8] sm:$0xff]  ;;  %620 = vmatpush.bf16.msra.mxu1 %v1210_v1  ;;  %v1217_v6 = vld [vmem:[#allocation2 + $0xb0] sm:$0xff]  ;;  %v1208_v9 = vld [vmem:[#allocation2 + $0x68] sm:$0xff] }
   0x8   :  { %v1226_v3 = vld [vmem:[#allocation2 + $0xf8] sm:$0xff]  ;;  %634 = vmatpush.bf16.msra.mxu2 %v1218_v2  ;;  %v1225_v7 = vld [vmem:[#allocation2 + $0xf0] sm:$0xff]  ;;  %v1216_v10 = vld [vmem:[#allocation2 + $0xa8] sm:$0xff] }
   0x9   :  { %648 = vmatpush.bf16.msra.mxu3 %v1226_v3  ;;  %v1224_v11 = vld [vmem:[#allocation2 + $0xe8] sm:$0xff]  ;;  %v1199_v12 = vld [vmem:[#allocation2 + $0x20] sm:$0xff]  ;;  %v1198_v16 = vld [vmem:[#allocation2 + $0x18] sm:$0xff] }
   0xa   :  { %607 = vmatpush.bf16.msra.mxu0 %v1201_v4  ;;  %v1207_v13 = vld [vmem:[#allocation2 + $0x60] sm:$0xff]  ;;  %v1206_v17 = vld [vmem:[#allocation2 + $0x58] sm:$0xff]  ;;  %v1197_v20 = vld [vmem:[#allocation2 + $0x10] sm:$0xff] }
   0xb   :  { %621 = vmatpush.bf16.msra.mxu1 %v1209_v5  ;;  %v1215_v14 = vld [vmem:[#allocation2 + $0xa0] sm:$0xff]  ;;  %v1214_v18 = vld [vmem:[#allocation2 + $0x98] sm:$0xff]  ;;  %v1205_v21 = vld [vmem:[#allocation2 + $0x50] sm:$0xff] }
   0xc   :  { %635 = vmatpush.bf16.msra.mxu2 %v1217_v6  ;;  %v1223_v15 = vld [vmem:[#allocation2 + $0xe0] sm:$0xff]  ;;  %v1222_v19 = vld [vmem:[#allocation2 + $0xd8] sm:$0xff]  ;;  %v1213_v22 = vld [vmem:[#allocation2 + $0x90] sm:$0xff] }
   0xd   :  { %649 = vmatpush.bf16.msra.mxu3 %v1225_v7  ;;  %v1221_v23 = vld [vmem:[#allocation2 + $0xd0] sm:$0xff]  ;;  %v1196_v24 = vld [vmem:[#allocation2 + $0x8] sm:$0xff]  ;;  %v1195_v28 = vld [vmem:[#allocation2] sm:$0xff] }
   0xe   :  { %608 = vmatpush.bf16.msra.mxu0 %v1200_v8  ;;  %v1204_v25 = vld [vmem:[#allocation2 + $0x48] sm:$0xff]  ;;  %v1203_v29 = vld [vmem:[#allocation2 + $0x40] sm:$0xff]  ;;  %v1234_v32 = vld [vmem:[#allocation2 + $0x138] sm:$0xff] }
   0xf   :  { %622 = vmatpush.bf16.msra.mxu1 %v1208_v9  ;;  %v1212_v26 = vld [vmem:[#allocation2 + $0x88] sm:$0xff]  ;;  %v1211_v30 = vld [vmem:[#allocation2 + $0x80] sm:$0xff]  ;;  %v1242_v33 = vld [vmem:[#allocation2 + $0x178] sm:$0xff] }
  0x10   :  { %636 = vmatpush.bf16.msra.mxu2 %v1216_v10  ;;  %v1220_v27 = vld [vmem:[#allocation2 + $0xc8] sm:$0xff]  ;;  %v1219_v31 = vld [vmem:[#allocation2 + $0xc0] sm:$0xff]  ;;  %v1250_v42 = vld [vmem:[#allocation2 + $0x1b8] sm:$0xff] }
  0x11   :  { %650 = vmatpush.bf16.msra.mxu3 %v1224_v11  ;;  %v877_v34 = vld [vmem:[%s1440_s0 + $0x8] sm:$0xf]  ;;  %v869_v36 = vld [vmem:[%s1440_s0] sm:$0xf]  ;;  %v1188_v38 = vld [vmem:[%s1440_s0 + $0xc] sm:$0xf] }
  0x12   :  { %609 = vmatpush.bf16.msra.mxu0 %v1199_v12  ;;  %v1192_v35 = vld [vmem:[%s1440_s0 + $0x24] sm:$0xf0]  ;;  %v1191_v37 = vld [vmem:[%s1440_s0 + $0x1c] sm:$0xf0]  ;;  %v879_v39 = vld [vmem:[%s1440_s0 + $0x28] sm:$0xf0] }
  0x13   :  { %623 = vmatpush.bf16.msra.mxu1 %v1207_v13  ;;  %v1187_v40 = vld [vmem:[%s1440_s0 + $0x4] sm:$0xf]  ;;  %v1258_v43 = vld [vmem:[#allocation2 + $0x1f8] sm:$0xff]  ;;  %v878_v44 = vor.u32 %v1192_v35, %v877_v34  ;;  %v870_v45 = vor.u32 %v1191_v37, %v869_v36  ;;  %v882_v46 = vor.u32 %v1188_v38, %v879_v39  ;;  %v1233_v48 = vld [vmem:[#allocation2 + $0x130] sm:$0xff] }
  0x14   :  { %637 = vmatpush.bf16.msra.mxu2 %v1215_v14  ;;  %v871_v41 = vld [vmem:[%s1440_s0 + $0x20] sm:$0xf0]  ;;  %v1241_v49 = vld [vmem:[#allocation2 + $0x170] sm:$0xff]  ;;  %v1232_v52 = vld [vmem:[#allocation2 + $0x128] sm:$0xff] }
  0x15   :  { %651 = vmatpush.bf16.msra.mxu3 %v1223_v15  ;;  %v874_v47 = vor.u32 %v1187_v40, %v871_v41  ;;  %v1249_v50 = vld [vmem:[#allocation2 + $0x1b0] sm:$0xff]  ;;  %v1240_v53 = vld [vmem:[#allocation2 + $0x168] sm:$0xff]  ;;  %v1231_v56 = vld [vmem:[#allocation2 + $0x120] sm:$0xff] }
  0x16   :  { %610 = vmatpush.bf16.msra.mxu0 %v1198_v16  ;;  %v1257_v51 = vld [vmem:[#allocation2 + $0x1f0] sm:$0xff]  ;;  %v1248_v54 = vld [vmem:[#allocation2 + $0x1a8] sm:$0xff]  ;;  %v1239_v57 = vld [vmem:[#allocation2 + $0x160] sm:$0xff] }
  0x17   :  { %624 = vmatpush.bf16.msra.mxu1 %v1206_v17  ;;  %v1256_v55 = vld [vmem:[#allocation2 + $0x1e8] sm:$0xff]  ;;  %v1247_v58 = vld [vmem:[#allocation2 + $0x1a0] sm:$0xff]  ;;  %v1230_v60 = vld [vmem:[#allocation2 + $0x118] sm:$0xff] }
  0x18   :  { %638 = vmatpush.bf16.msra.mxu2 %v1214_v18  ;;  %v1255_v59 = vld [vmem:[#allocation2 + $0x1e0] sm:$0xff]  ;;  %v1238_v61 = vld [vmem:[#allocation2 + $0x158] sm:$0xff]  ;;  %v1229_v0 = vld [vmem:[#allocation2 + $0x110] sm:$0xff] }
  0x19   :  { %652 = vmatpush.bf16.msra.mxu3 %v1222_v19  ;;  %v1246_v62 = vld [vmem:[#allocation2 + $0x198] sm:$0xff]  ;;  %v1237_v1 = vld [vmem:[#allocation2 + $0x150] sm:$0xff]  ;;  %v1228_v4 = vld [vmem:[#allocation2 + $0x108] sm:$0xff] }
  0x1a   :  { %611 = vmatpush.bf16.msra.mxu0 %v1197_v20  ;;  %v1254_v63 = vld [vmem:[#allocation2 + $0x1d8] sm:$0xff]  ;;  %v1245_v2 = vld [vmem:[#allocation2 + $0x190] sm:$0xff]  ;;  %v1236_v5 = vld [vmem:[#allocation2 + $0x148] sm:$0xff] }
  0x1b   :  { %625 = vmatpush.bf16.msra.mxu1 %v1205_v21  ;;  %v1253_v3 = vld [vmem:[#allocation2 + $0x1d0] sm:$0xff]  ;;  %v1244_v6 = vld [vmem:[#allocation2 + $0x188] sm:$0xff]  ;;  %v1227_v8 = vld [vmem:[#allocation2 + $0x100] sm:$0xff] }
  0x1c   :  { %639 = vmatpush.bf16.msra.mxu2 %v1213_v22  ;;  %v1252_v7 = vld [vmem:[#allocation2 + $0x1c8] sm:$0xff]  ;;  %v1235_v9 = vld [vmem:[#allocation2 + $0x140] sm:$0xff]  ;;  %v885_v12 = vld [vmem:[%s1440_s0 + $0x10] sm:$0xf] }
  0x1d   :  { %653 = vmatpush.bf16.msra.mxu3 %v1221_v23  ;;  %v1243_v10 = vld [vmem:[#allocation2 + $0x180] sm:$0xff]  ;;  %v1193_v13 = vld [vmem:[%s1440_s0 + $0x2c] sm:$0xf0]  ;;  %v1189_v14 = vld [vmem:[%s1440_s0 + $0x14] sm:$0xf] }
  0x1e   :  { %612 = vmatpush.bf16.msra.mxu0 %v1196_v24  ;;  %v1251_v11 = vld [vmem:[#allocation2 + $0x1c0] sm:$0xff]  ;;  %v887_v15 = vld [vmem:[%s1440_s0 + $0x30] sm:$0xf0]  ;;  %v893_v16 = vld [vmem:[%s1440_s0 + $0x18] sm:$0xf]  ;;  %v886_v20 = vor.u32 %v1193_v13, %v885_v12 }
  0x1f   :  { %626 = vmatpush.bf16.msra.mxu1 %v1204_v25  ;;  %v1194_v17 = vld [vmem:[%s1440_s0 + $0x34] sm:$0xf0]  ;;  %v1190_v18 = vld [vmem:[%s1440_s0 + $0x1c] sm:$0xf]  ;;  %v890_v21 = vor.u32 %v1189_v14, %v887_v15  ;;  %v1270_v25 = vld [vmem:[%s1442_s2] ss:$0 sm:$0xff] }
  0x20   :  { %640 = vmatpush.bf16.msra.mxu2 %v1212_v26  ;;  %v895_v19 = vld [vmem:[%s1440_s0 + $0x38] sm:$0xf0]  ;;  %v894_v22 = vor.u32 %v1194_v17, %v893_v16  ;;  %v1261_v12 = vld [vmem:[%s1445_s5 + $0x10] sm:$0xff]  ;;  %v1260_v13 = vld [vmem:[%s1445_s5 + $0x8] sm:$0xff] }
  0x21   :  { %654 = vmatpush.bf16.msra.mxu3 %v1220_v27  ;;  %v898_v23 = vor.u32 %v1190_v18, %v895_v19  ;;  %v1259_v16 = vld [vmem:[%s1445_s5] sm:$0xff] }
  0x22   :  { %613 = vmatpush.bf16.msra.mxu0 %v1195_v28 }
  0x23   :  { %627 = vmatpush.bf16.msra.mxu1 %v1203_v29 }
  0x24   :  { %641 = vmatpush.bf16.msra.mxu2 %v1211_v30 }
  0x25   :  { %655 = vmatpush.bf16.msra.mxu3 %v1219_v31  ;;  %614 = vmatmul.bf16.vlgmr.msra.gmra.mxu0 %v870_v45 }
  0x26   :  { %662 = vmatpush.bf16.msrb.mxu0 %v1234_v32  ;;  %628 = vmatmul.bf16.vlgmr.msra.gmra.mxu1 %v874_v47 }
  0x27   :  { %676 = vmatpush.bf16.msrb.mxu1 %v1242_v33  ;;  %642 = vmatmul.bf16.vlgmr.msra.gmra.mxu2 %v878_v44 }
  0x28   :  { %690 = vmatpush.bf16.msrb.mxu2 %v1250_v42  ;;  %656 = vmatmul.bf16.vlgmr.msra.gmra.mxu3 %v882_v46 }
  0x29   :  { %704 = vmatpush.bf16.msrb.mxu3 %v1258_v43 }
  0x2a   :  { %663 = vmatpush.bf16.msrb.mxu0 %v1233_v48 }
  0x2b   :  { %677 = vmatpush.bf16.msrb.mxu1 %v1241_v49 }
  0x2c   :  { %691 = vmatpush.bf16.msrb.mxu2 %v1249_v50 }
  0x2d   :  { %705 = vmatpush.bf16.msrb.mxu3 %v1257_v51 }
  0x2e   :  { %664 = vmatpush.bf16.msrb.mxu0 %v1232_v52 }
  0x2f   :  { %678 = vmatpush.bf16.msrb.mxu1 %v1240_v53 }
  0x30   :  { %692 = vmatpush.bf16.msrb.mxu2 %v1248_v54 }
  0x31   :  { %706 = vmatpush.bf16.msrb.mxu3 %v1256_v55 }
  0x32   :  { %665 = vmatpush.bf16.msrb.mxu0 %v1231_v56 }
  0x33   :  { %679 = vmatpush.bf16.msrb.mxu1 %v1239_v57 }
  0x34   :  { %693 = vmatpush.bf16.msrb.mxu2 %v1247_v58 }
  0x35   :  { %707 = vmatpush.bf16.msrb.mxu3 %v1255_v59  ;;  %v728_v59 = vlaneseq }
  0x36   :  { %666 = vmatpush.bf16.msrb.mxu0 %v1230_v60 }
  0x37   :  { %680 = vmatpush.bf16.msrb.mxu1 %v1238_v61  ;;  %v729_v60 = vand.u32 127, %v728_v59 }
  0x38   :  { %694 = vmatpush.bf16.msrb.mxu2 %v1246_v62 }
  0x39   :  { %708 = vmatpush.bf16.msrb.mxu3 %v1254_v63  ;;  %vm730_vm0 = vcmp.lt.s32.totalorder %v729_v60, 32 }
  0x3a   :  { %667 = vmatpush.bf16.msrb.mxu0 %v1229_v0 }
  0x3b   :  { %681 = vmatpush.bf16.msrb.mxu1 %v1237_v1 }
  0x3c   :  { %695 = vmatpush.bf16.msrb.mxu2 %v1245_v2 }
  0x3d   :  { %709 = vmatpush.bf16.msrb.mxu3 %v1253_v3 }
  0x3e   :  { %668 = vmatpush.bf16.msrb.mxu0 %v1228_v4 }
  0x3f   :  { %682 = vmatpush.bf16.msrb.mxu1 %v1236_v5 }
  0x40   :  { %696 = vmatpush.bf16.msrb.mxu2 %v1244_v6 }
  0x41   :  { %710 = vmatpush.bf16.msrb.mxu3 %v1252_v7  ;;  %v1266_v7 = vld [vmem:[%s1445_s5 + $0x38] sm:$0xff] }
  0x42   :  { %669 = vmatpush.bf16.msrb.mxu0 %v1227_v8  ;;  %v1265_v8 = vld [vmem:[%s1445_s5 + $0x30] sm:$0xff] }
  0x43   :  { %683 = vmatpush.bf16.msrb.mxu1 %v1235_v9  ;;  %v1264_v9 = vld [vmem:[%s1445_s5 + $0x28] sm:$0xff] }
  0x44   :  { %697 = vmatpush.bf16.msrb.mxu2 %v1243_v10  ;;  %v1263_v10 = vld [vmem:[%s1445_s5 + $0x20] sm:$0xff] }
  0x45   :  { %711 = vmatpush.bf16.msrb.mxu3 %v1251_v11  ;;  %670 = vmatmul.bf16.vlgmr.msrb.gmra.mxu0 %v886_v20  ;;  %v1262_v11 = vld [vmem:[%s1445_s5 + $0x18] sm:$0xff] }
  0x46   :  { %684 = vmatmul.bf16.vlgmr.msrb.gmra.mxu1 %v890_v21  ;;  %846 = vmatpush.bf16.msra.mxu0 %v1266_v7 }
  0x47   :  { %698 = vmatmul.bf16.vlgmr.msrb.gmra.mxu2 %v894_v22 }
  0x48   :  { %712 = vmatmul.bf16.vlgmr.msrb.gmra.mxu3 %v898_v23 }
  0x4a   :  { %847 = vmatpush.bf16.msra.mxu0 %v1265_v8 }
  0x4e   :  { %848 = vmatpush.bf16.msra.mxu0 %v1264_v9 }
  0x52   :  { %849 = vmatpush.bf16.msra.mxu0 %v1263_v10 }
  0x56   :  { %850 = vmatpush.bf16.msra.mxu0 %v1262_v11 }
  0x5a   :  { %851 = vmatpush.bf16.msra.mxu0 %v1261_v12 }
  0x5e   :  { %852 = vmatpush.bf16.msra.mxu0 %v1260_v13 }
  0x62   :  { %853 = vmatpush.bf16.msra.mxu0 %v1259_v16 }
  0xa2   :  { %v615_v24 = vpop.f32.mrf.mxu0 }
  0xa3   :  { %v629_v26 = vpop.f32.mrf.mxu1  ;;  %v616_v27 = vadd.f32 %v1270_v25, %v615_v24 }
  0xa5   :  { %v630_v30 = vadd.f32 %v629_v26, %v616_v27 }
  0xaa   :  { %v643_v28 = vpop.f32.mrf.mxu2  ;;  %v617_v31 = vpop.f32.mrf.mxu0 }
  0xab   :  { %v657_v29 = vpop.f32.mrf.mxu3  ;;  %v631_v32 = vpop.f32.mrf.mxu1  ;;  %v644_v33 = vadd.f32 %v643_v28, %v630_v30  ;;  %v618_v34 = vadd.f32 %v1270_v25, %v617_v31 }
  0xad   :  { %v658_v37 = vadd.f32 %v657_v29, %v644_v33  ;;  %v632_v38 = vadd.f32 %v631_v32, %v618_v34  ;;  %v1271_v34 = vld [vmem:[%s1443_s3] ss:$0 sm:$0xff] }
  0xb2   :  { %v645_v35 = vpop.f32.mrf.mxu2 }
  0xb3   :  { %v659_v36 = vpop.f32.mrf.mxu3  ;;  %v646_v42 = vadd.f32 %v645_v35, %v632_v38 }
  0xb5   :  { %v660_v46 = vadd.f32 %v659_v36, %v646_v42 }
  0xc2   :  { %v671_v39 = vpop.f32.mrf.mxu0 }
  0xc3   :  { %v672_v40 = vadd.f32 %v671_v39, %v658_v37  ;;  %v685_v41 = vpop.f32.mrf.mxu1  ;;  %v1272_v39 = vld [vmem:[%s1444_s4] ss:$0 sm:$0xff] }
  0xc5   :  { %v686_v43 = vadd.f32 %v685_v41, %v672_v40 }
  0xca   :  { %v699_v44 = vpop.f32.mrf.mxu2  ;;  %v673_v48 = vpop.f32.mrf.mxu0 }
  0xcb   :  { %v713_v45 = vpop.f32.mrf.mxu3  ;;  %v700_v47 = vadd.f32 %v699_v44, %v686_v43  ;;  %v674_v50 = vadd.f32 %v673_v48, %v660_v46  ;;  %v687_v52 = vpop.f32.mrf.mxu1  ;;  %v1273_v44 = vld [vmem:[%s1446_s6] ss:$0 sm:$0xff] }
  0xcd   :  { %v714_v49 = vadd.f32 %v713_v45, %v700_v47  ;;  %v688_v53 = vadd.f32 %v687_v52, %v674_v50 }
  0xcf   :  { %v718_v51 = vmax.f32 %v714_v49, 0.0 }
  0xd1   :  { %720 = vadd.xlane.f32.xlu0 %v718_v51 }
  0xd2   :  { %v701_v54 = vpop.f32.mrf.mxu2 }
  0xd3   :  { %v702_v55 = vadd.f32 %v701_v54, %v688_v53  ;;  %v715_v56 = vpop.f32.mrf.mxu3 }
  0xd5   :  { %v716_v57 = vadd.f32 %v715_v56, %v702_v55 }
  0xd7   :  { %v719_v58 = vmax.f32 %v716_v57, 0.0 }
  0xd9   :  { %722 = vadd.xlane.f32.xlu0 %v719_v58 }
 0x144   :  { %v721_v61 = vpop.xlane.xlu0 %720 }
 0x145   :  { %v724_v62 = vmul.f32 0.03125, %v721_v61 }
 0x147   :  { %v726_v63 = vsub.f32 %v718_v51, %v724_v62 }
 0x149   :  { %v731_v0 = vsel %vm730_vm0, %v726_v63, 0.0 }
 0x14a   :  { %v733_v1 = vmul.f32 %v731_v0, %v731_v0 }
 0x14c   :  { %735 = vadd.xlane.f32.xlu1 %v733_v1  ;;  %v723_v2 = vpop.xlane.xlu0 %722 }
 0x14d   :  { %v725_v3 = vmul.f32 0.03125, %v723_v2 }
 0x14f   :  { %v727_v4 = vsub.f32 %v719_v58, %v725_v3 }
 0x151   :  { %v732_v5 = vsel %vm730_vm0, %v727_v4, 0.0 }
 0x152   :  { %v734_v6 = vmul.f32 %v732_v5, %v732_v5 }
 0x154   :  { %737 = vadd.xlane.f32.xlu1 %v734_v6 }
 0x1bf   :  { %v736_v14 = vpop.xlane.xlu1 %735 }
 0x1c0   :  { %v739_v15 = vmul.f32 0.03125, %v736_v14 }
 0x1c2   :  { %v741_v17 = vadd.f32 1e-05, %v739_v15 }
 0x1c4   :  { %1274 = vrsqrt.f32 %v741_v17  ;;  %vm749_vm2 = vweird.f32 %v741_v17 }
 0x1c7   :  { %v738_v18 = vpop.xlane.xlu1 %737 }
 0x1c8   :  { %v740_v19 = vmul.f32 0.03125, %v738_v18 }
 0x1ca   :  { %v1275_v20 = vpop.eup %1274  ;;  %v742_v21 = vadd.f32 1e-05, %v740_v19 }
 0x1cb   :  { %v744_v22 = vmul.f32 %v1275_v20, %v741_v17  ;;  %vm750_vm1 = vweird.f32 %v1275_v20 }
 0x1cc   :  { %1276 = vrsqrt.f32 %v742_v21  ;;  %vm751_vm3 = vmor %vm749_vm2, %vm750_vm1  ;;  %vm759_vm5 = vweird.f32 %v742_v21 }
 0x1cd   :  { %v745_v23 = vmul.f32 %v1275_v20, %v744_v22 }
 0x1cf   :  { %v746_v24 = vmul.f32 0.5, %v745_v23 }
 0x1d1   :  { %v747_v25 = vsub.f32 1.5, %v746_v24 }
 0x1d2   :  { %v1277_v26 = vpop.eup %1276 }
 0x1d3   :  { %v748_v27 = vmul.f32 %v1275_v20, %v747_v25  ;;  %v754_v28 = vmul.f32 %v1277_v26, %v742_v21  ;;  %vm760_vm4 = vweird.f32 %v1277_v26 }
 0x1d4   :  { %vm761_vm6 = vmor %vm759_vm5, %vm760_vm4 }
 0x1d5   :  { %v755_v29 = vmul.f32 %v1277_v26, %v754_v28  ;;  %v752_v30 = vsel %vm751_vm3, %v1275_v20, %v748_v27 }
 0x1d6   :  { %v763_v33 = vmul.f32 %v752_v30, %v726_v63 }
 0x1d7   :  { %v756_v31 = vmul.f32 0.5, %v755_v29 }
 0x1d8   :  { %v769_v38 = vmul.f32 %v1271_v34, %v763_v33 }
 0x1d9   :  { %v757_v32 = vsub.f32 1.5, %v756_v31 }
 0x1da   :  { %v775_v41 = vadd.f32 %v1272_v39, %v769_v38 }
 0x1db   :  { %v758_v35 = vmul.f32 %v1277_v26, %v757_v32 }
 0x1dd   :  { %v762_v36 = vsel %vm761_vm6, %v1277_v26, %v758_v35 }
 0x1de   :  { %v764_v37 = vmul.f32 %v762_v36, %v727_v4 }
 0x1e0   :  { %v770_v40 = vmul.f32 %v1271_v34, %v764_v37 }
 0x1e2   :  { %v776_v42 = vadd.f32 %v1272_v39, %v770_v40 }
 0x1e4   :  { %v777_v43 = vpack.c.bf16 %v776_v42, %v775_v41 }
 0x1e6   :  { %854 = vmatmul.bf16.vlgmr.msra.gmra.mxu0 %v777_v43 }
 0x263   :  { %v855_v45 = vpop.f32.mrf.mxu0 }
 0x264   :  { %v856_v46 = vadd.f32 %v1273_v44, %v855_v45 }
 0x266   :  { %860 = vst [vmem:[%s1447_s7] sm:$0xff] %v856_v46 }
 0x26b   :  { %v857_v47 = vpop.f32.mrf.mxu0 }
 0x26c   :  { %v858_v48 = vadd.f32 %v1273_v44, %v857_v47 }
 0x26e   :  { %861 = vst [vmem:[%s1447_s7 + $0x8] sm:$0xff] %v858_v48 }
 0x26f   :  { %866 = vsyncpa [#allocation3], 1 }

</bundles_post_ra>
